<compile_context>
chip_gen: v6e
topology: v6e:2x2x1
jax: 0.10.0
libtpu: 0.0.40
codegen_flags: <defaults>
</compile_context>

<pallas_src>
import functools
import jax
import jax.numpy as jnp
from jax.experimental import pallas as pl
from jax.experimental.pallas import tpu as pltpu

_VMEM_LIMIT = 32 * 1024 * 1024


# ------------------------------ tile heuristics ------------------------------
def _round_up(x, m):
    return (x + m - 1) // m * m


def _pick_tk(K):
    Kp = _round_up(K, 128)
    if Kp <= 1024:
        return Kp
    for c in (512, 384, 256):
        if Kp % c == 0:
            return c
    return 128


def _pick_tn(N):
    Np = _round_up(N, 128)
    if Np >= 256 and Np % 256 == 0:
        return 256
    return 128


def _pick_tm(M):
    Mp = _round_up(M, 128)
    if Mp >= 1024 and Mp % 256 == 0:
        return 256
    return 128


# ------------------------------- Pallas GEMMs --------------------------------
def _gemm_kernel(a_ref, w_ref, b_ref, o_ref, acc_ref, *, activation):
    """Tiled GEMM, bf16 operands, f32 accumulator, fused bias + activation."""
    @pl.when(pl.program_id(2) == 0)
    def _():
        acc_ref[...] = jnp.zeros_like(acc_ref)

    acc_ref[...] += jnp.dot(a_ref[...], w_ref[...],
                            preferred_element_type=jnp.float32)

    @pl.when(pl.program_id(2) == pl.num_programs(2) - 1)
    def _():
        r = acc_ref[...] + b_ref[...]
        if activation == "relu":
            r = jnp.maximum(r, 0.0)
        elif activation == "sigmoid":
            r = pl.reciprocal(1.0 + jnp.exp(-r), approx=True)
        o_ref[...] = r.astype(o_ref.dtype)


def _head_kernel(a_ref, w1_ref, b1_ref, w2_ref, b2_ref, o_ref, acc_ref, *, n_sig):
    """Fused head: (3x3 conv GEMM + bias + relu) then (1x1 conv + bias + act)."""
    @pl.when(pl.program_id(1) == 0)
    def _():
        acc_ref[...] = jnp.zeros_like(acc_ref)

    acc_ref[...] += jnp.dot(a_ref[...], w1_ref[...],
                            preferred_element_type=jnp.float32)

    @pl.when(pl.program_id(1) == pl.num_programs(1) - 1)
    def _():
        h = jnp.maximum(acc_ref[...] + b1_ref[...], 0.0)          # relu, f32
        r = jnp.dot(h.astype(jnp.bfloat16), w2_ref[...],
                    preferred_element_type=jnp.float32) + b2_ref[...]
        if n_sig > 0:   # sigmoid on the first n_sig channels only (hm head)
            col = jax.lax.broadcasted_iota(jnp.int32, r.shape, 1)
            sig = pl.reciprocal(1.0 + jnp.exp(-r), approx=True)
            r = jnp.where(col < n_sig, sig, r)
        o_ref[...] = r.astype(o_ref.dtype)


def gemm_bias_act(a, gw, activation="none", out_dtype=jnp.float32):
    """a: (M, K) ; gw: prepped weight dict -> (M, N)."""
    M, K = a.shape
    assert K == gw["K"]
    TK, TN = gw["TK"], gw["TN"]
    Kp, Np = gw["w"].shape
    TM = _pick_tm(M)
    Mp = _round_up(M, TM)
    a_p = jnp.pad(a.astype(jnp.bfloat16), ((0, Mp - M), (0, Kp - K)))

    kernel = functools.partial(_gemm_kernel, activation=activation)
    out = pl.pallas_call(
        kernel,
        out_shape=jax.ShapeDtypeStruct((Mp, Np), out_dtype),
        grid_spec=pltpu.PrefetchScalarGridSpec(
            num_scalar_prefetch=0,
            grid=(Mp // TM, Np // TN, Kp // TK),
            in_specs=[
                pl.BlockSpec((TM, TK), lambda i, j, k: (i, k)),
                pl.BlockSpec((TK, TN), lambda i, j, k: (k, j)),
                pl.BlockSpec((1, TN), lambda i, j, k: (0, j)),
            ],
            out_specs=pl.BlockSpec((TM, TN), lambda i, j, k: (i, j)),
            scratch_shapes=[pltpu.VMEM((TM, TN), jnp.float32)],
        ),
        compiler_params=pltpu.CompilerParams(
            dimension_semantics=("parallel", "parallel", "arbitrary"),
            vmem_limit_bytes=_VMEM_LIMIT),
    )(a_p, gw["w"], gw["b"])
    return out[:M, :gw["N"]]


def head_gemm(a, hw, n_sig=0):
    """Fused head GEMM. a: (M, K) -> (M, N2)."""
    M, K = a.shape
    assert K == hw["K"]
    TK = hw["TK"]
    Kp, N1 = hw["w1"].shape
    N2P = hw["w2"].shape[1]
    TM = _pick_tm(M)
    Mp = _round_up(M, TM)
    a_p = jnp.pad(a.astype(jnp.bfloat16), ((0, Mp - M), (0, Kp - K)))

    kernel = functools.partial(_head_kernel, n_sig=n_sig)
    out = pl.pallas_call(
        kernel,
        out_shape=jax.ShapeDtypeStruct((Mp, N2P), jnp.float32),
        grid_spec=pltpu.PrefetchScalarGridSpec(
            num_scalar_prefetch=0,
            grid=(Mp // TM, Kp // TK),
            in_specs=[
                pl.BlockSpec((TM, TK), lambda i, k: (i, k)),
                pl.BlockSpec((TK, N1), lambda i, k: (k, 0)),
                pl.BlockSpec((1, N1), lambda i, k: (0, 0)),
                pl.BlockSpec((N1, N2P), lambda i, k: (0, 0)),
                pl.BlockSpec((1, N2P), lambda i, k: (0, 0)),
            ],
            out_specs=pl.BlockSpec((TM, N2P), lambda i, k: (i, 0)),
            scratch_shapes=[pltpu.VMEM((TM, N1), jnp.float32)],
        ),
        compiler_params=pltpu.CompilerParams(
            dimension_semantics=("parallel", "arbitrary"),
            vmem_limit_bytes=_VMEM_LIMIT),
    )(a_p, hw["w1"], hw["b1"], hw["w2"], hw["b2"])
    return out[:M, :hw["N2"]]


# --------------------------- conv / deconv via GEMM --------------------------
def _im2col(x, kh, kw, stride, pad):
    # x: (B, H, W, C) NHWC
    B, H, W, C = x.shape
    x_p = jnp.pad(x, ((0, 0), (pad, pad), (pad, pad), (0, 0)))
    Ho = (H + 2 * pad - kh) // stride + 1
    Wo = (W + 2 * pad - kw) // stride + 1
    cols = []
    for di in range(kh):
        for dj in range(kw):
            cols.append(
                x_p[:, di:di + Ho * stride:stride, dj:dj + Wo * stride:stride, :])
    patches = jnp.concatenate(cols, axis=-1)            # (B, Ho, Wo, kh*kw*C)
    return patches.reshape(B * Ho * Wo, kh * kw * C), (B, Ho, Wo)


def conv2d(x, gw, kh=3, kw=3, stride=1, pad=1, activation="none",
           out_dtype=jnp.bfloat16):
    a, (Bn, Ho, Wo) = _im2col(x, kh, kw, stride, pad)
    y = gemm_bias_act(a, gw, activation, out_dtype)
    return y.reshape(Bn, Ho, Wo, gw["N"])


def deconv_subpixel(x, gw, out_dtype=jnp.bfloat16):
    """ConvTranspose2d(k=4,s=2,p=1) + BN(identity, folded) + ReLU.

    Sub-pixel lowering: one GEMM over 2x2 patches of the pad-1 input; the four
    output phases are concatenated along N (gw["N"] == 4 * C_out)."""
    Be, H, W, _ = x.shape
    a, _ = _im2col(x, 2, 2, 1, 1)                       # K = 4*C_in, M = Be*(H+1)*(W+1)
    y = gemm_bias_act(a, gw, "relu", out_dtype)
    C_out = gw["N"] // 4
    y = y.reshape(Be, H + 1, W + 1, 4 * C_out)
    y00 = y[:, :H, :W, 0 * C_out:1 * C_out]
    y01 = y[:, :H, 1:, 1 * C_out:2 * C_out]
    y10 = y[:, 1:, :W, 2 * C_out:3 * C_out]
    y11 = y[:, 1:, 1:, 3 * C_out:4 * C_out]
    top = jnp.stack([y00, y01], axis=3)                 # (Be, H, W, 2, C)
    bot = jnp.stack([y10, y11], axis=3)
    out = jnp.stack([top, bot], axis=2)                 # (Be, H, 2, W, 2, C)
    return out.reshape(Be, 2 * H, 2 * W, C_out)


# -------------------------------- parameters ---------------------------------
def _conv_w_to_mat(wt):
    # torch conv weight (C_out, C_in, kh, kw) -> GEMM (kh*kw*C_in, C_out)
    C_out, C_in, kh, kw = wt.shape
    return jnp.transpose(wt, (2, 3, 1, 0)).reshape(kh * kw * C_in, C_out)


def _deconv_w_to_mat(wt):
    # torch ConvTranspose2d weight (C_in, C_out, 4, 4) -> sub-pixel GEMM
    # weight (4*C_in, 4*C_out): phases (r, s) in order 00, 01, 10, 11.
    C_i, C_o = wt.shape[0], wt.shape[1]
    mats = []
    for r in (0, 1):
        for s in (0, 1):
            sub = wt[:, :, (3 - r, 1 - r), :][:, :, :, (3 - s, 1 - s)]  # (Ci,Co,2,2)
            mats.append(jnp.transpose(sub, (2, 3, 0, 1)).reshape(4 * C_i, C_o))
    return jnp.concatenate(mats, axis=1)                # (4*C_i, 4*C_o)


def prep_gemm(w_mat, bias):
    """Hoisted weight prep: pad + bf16 cast once at init time."""
    K, N = w_mat.shape
    TK, TN = _pick_tk(K), _pick_tn(N)
    Kp, Np = _round_up(K, TK), _round_up(N, TN)
    w_p = jnp.pad(w_mat.astype(jnp.bfloat16), ((0, Kp - K), (0, Np - N)))
    b_p = jnp.pad(bias.astype(jnp.float32), (0, Np - N)).reshape(1, Np)
    return {"w": w_p, "b": b_p, "K": K, "N": N, "TK": TK, "TN": TN}


def prep_head(w1_mat, b1, w2_mat, b2):
    """Fused-head prep: 3x3 GEMM weight + 1x1 weight applied in the epilogue."""
    K1, N1 = w1_mat.shape
    N2 = w2_mat.shape[1]
    TK = _pick_tk(K1)
    Kp = _round_up(K1, TK)
    N2P = 128                                            # lane-dense output store
    w1_p = jnp.pad(w1_mat.astype(jnp.bfloat16), ((0, Kp - K1), (0, 0)))
    b1_p = b1.astype(jnp.float32).reshape(1, N1)
    w2_p = jnp.pad(w2_mat.astype(jnp.bfloat16), ((0, 0), (0, N2P - N2)))
    b2_p = jnp.pad(b2.astype(jnp.float32), (0, N2P - N2)).reshape(1, N2P)
    return {"w1": w1_p, "b1": b1_p, "w2": w2_p, "b2": b2_p,
            "K": K1, "N2": N2, "TK": TK}


def init_params(key, C_in=3, K=2, num_classes=3, head_conv=64):
    ks = jax.random.split(key, 16)

    def w(k, shape, scale=0.05):
        return jax.random.normal(k, shape, jnp.float32) * scale

    bn_scale = 1.0 / jnp.sqrt(1.0 + 1e-5)  # BN(w=1,b=0,mean=0,var=1) folded in
    p = {}
    # backbone stand-in (TODO(synk): MOC_ResNet not provided)
    p["bb1"] = prep_gemm(_conv_w_to_mat(w(ks[0], (64, C_in, 3, 3))),
                         jnp.zeros((64,), jnp.float32))
    p["bb2"] = prep_gemm(_conv_w_to_mat(w(ks[1], (512, 64, 3, 3))),
                         jnp.zeros((512,), jnp.float32))
    # deconv_layers(inplanes=512): 3 x (ConvTranspose2d 4x4 s2 p1 bias=False)+BN+ReLU
    p["de1"] = prep_gemm(_deconv_w_to_mat(w(ks[2], (512, 256, 4, 4)) * bn_scale),
                         jnp.zeros((4 * 256,), jnp.float32))
    p["de2"] = prep_gemm(_deconv_w_to_mat(w(ks[3], (256, 256, 4, 4)) * bn_scale),
                         jnp.zeros((4 * 256,), jnp.float32))
    p["de3"] = prep_gemm(_deconv_w_to_mat(w(ks[4], (256, 256, 4, 4)) * bn_scale),
                         jnp.zeros((4 * 256,), jnp.float32))

    # MOC_Branch(256, 'resnet', head_conv, branch_info, K)
    # hm + mov share the K-frame concat input -> fuse their 3x3 stages (N=128)
    hm1_m = _conv_w_to_mat(w(ks[5], (head_conv, K * 256, 3, 3)))
    mov1_m = _conv_w_to_mat(w(ks[7], (head_conv, K * 256, 3, 3)))
    hm2_m = _conv_w_to_mat(w(ks[6], (num_classes, head_conv, 1, 1)))   # (64, nc)
    mov2_m = _conv_w_to_mat(w(ks[8], (2 * K, head_conv, 1, 1)))        # (64, 2K)
    w1_cat = jnp.concatenate([hm1_m, mov1_m], axis=1)                  # (9*K*256, 128)
    b1_cat = jnp.zeros((2 * head_conv,), jnp.float32)
    w2_bd = jnp.zeros((2 * head_conv, num_classes + 2 * K), jnp.float32)
    w2_bd = w2_bd.at[:head_conv, :num_classes].set(hm2_m)
    w2_bd = w2_bd.at[head_conv:, num_classes:].set(mov2_m)
    b2_cat = jnp.concatenate([jnp.full((num_classes,), -2.19, jnp.float32),
                              jnp.zeros((2 * K,), jnp.float32)])
    p["hmmov"] = prep_head(w1_cat, b1_cat, w2_bd, b2_cat)

    wh_head_conv = 64  # arch == 'resnet'
    wh1_m = _conv_w_to_mat(w(ks[9], (wh_head_conv, 256, 3, 3)))
    wh2_m = _conv_w_to_mat(w(ks[10], (2, wh_head_conv, 1, 1)))
    p["wh"] = prep_head(wh1_m, jnp.zeros((wh_head_conv,), jnp.float32),
                        wh2_m, jnp.zeros((2,), jnp.float32))
    return p


# -------------------------------- forward pass --------------------------------
def moc_net_forward(params, inputs, K, num_classes):
    # inputs: list of K arrays, each (B, C, H, W) NCHW (PyTorch convention)
    B, C, H, W = inputs[0].shape
    # torch.cat(input, dim=1).view(-1, cc, hh, ww)
    x = jnp.concatenate(inputs, axis=1).reshape(-1, C, H, W)    # (B*K, C, H, W)
    x = jnp.transpose(x, (0, 2, 3, 1))                          # NHWC

    # backbone (stand-in): two stride-2 3x3 conv + relu -> 512 channels
    x = conv2d(x, params["bb1"], 3, 3, 2, 1, "relu", jnp.bfloat16)
    x = conv2d(x, params["bb2"], 3, 3, 2, 1, "relu", jnp.bfloat16)

    # deconv_layers: 3 x (deconv + BN(identity, folded) + ReLU), sub-pixel GEMM
    x = deconv_subpixel(x, params["de1"], jnp.bfloat16)
    x = deconv_subpixel(x, params["de2"], jnp.bfloat16)
    x = deconv_subpixel(x, params["de3"], jnp.bfloat16)

    # F.interpolate(chunk, [36, 36])  (default mode='nearest')
    Hc, Wc = x.shape[1], x.shape[2]
    ih = (jnp.arange(36) * Hc) // 36
    iw = (jnp.arange(36) * Wc) // 36
    x = x[:, ih][:, :, iw]                                      # (B*K, 36, 36, 256)

    BK, Ho, Wo, Cc = x.shape
    xb = x.reshape(B, K, Ho, Wo, Cc)
    x_cat = jnp.transpose(xb, (0, 2, 3, 1, 4)).reshape(B, Ho, Wo, K * Cc)

    # hm + mov: one fused pallas_call (3x3+relu GEMM, 1x1+act in epilogue)
    a_cat, _ = _im2col(x_cat, 3, 3, 1, 1)
    hm_mov = head_gemm(a_cat, params["hmmov"], n_sig=num_classes)
    hm_mov = hm_mov.reshape(B, Ho, Wo, num_classes + 2 * K)
    hm = hm_mov[..., :num_classes]
    mov = hm_mov[..., num_classes:]

    # wh: per-frame head with shared weights -> batched over K in one call
    a_wh, _ = _im2col(x, 3, 3, 1, 1)
    wh = head_gemm(a_wh, params["wh"], n_sig=0)                 # (B*K*36*36, 2)
    wh = wh.reshape(B, K, Ho, Wo, 2)
    wh = jnp.transpose(wh, (0, 2, 3, 1, 4)).reshape(B, Ho, Wo, 2 * K)

    to_nchw = lambda t: jnp.transpose(t, (0, 3, 1, 2)).astype(jnp.float32)
    return [{"hm": to_nchw(hm), "mov": to_nchw(mov), "wh": to_nchw(wh)}]


# ------------------------------------ main ------------------------------------
if __name__ == "__main__":
    key = jax.random.PRNGKey(0)
    k_in, k_par = jax.random.split(key)

    B, C, H, W, K = 2, 3, 16, 16, 2
    num_classes = 3
    in_keys = jax.random.split(k_in, K)
    inputs = [jax.random.normal(in_keys[i], (B, C, H, W), jnp.float32)
              for i in range(K)]

    params = init_params(k_par, C_in=C, K=K, num_classes=num_classes, head_conv=64)

    out = moc_net_forward(params, inputs, K, num_classes)
    jax.block_until_ready(out)

    assert out[0]["hm"].shape == (B, num_classes, 36, 36)
    assert out[0]["mov"].shape == (B, 2 * K, 36, 36)
    assert out[0]["wh"].shape == (B, 2 * K, 36, 36)
    print("KERNEL_OK")
</pallas_src>

<mosaic_0001>
module attributes {stable_mosaic.version = 11 : i64} {
  func.func @_gemm_kernel(%arg0: i32, %arg1: i32, %arg2: i32, %arg3: memref<128x128xbf16, #tpu.memory_space<vmem>>, %arg4: memref<128x128xbf16, #tpu.memory_space<vmem>>, %arg5: memref<1x128xf32, #tpu.memory_space<vmem>>, %arg6: memref<128x128xbf16, #tpu.memory_space<vmem>>, %arg7: memref<128x128xf32, #tpu.memory_space<vmem>>) attributes {dimension_semantics = [#tpu.dimension_semantics<parallel>, #tpu.dimension_semantics<parallel>, #tpu.dimension_semantics<arbitrary>], iteration_bounds = array<i64: 2, 1, 1>, scalar_prefetch = 0 : i64, scratch_operands = 1 : i64, tpu.core_type = #tpu.core_type<tc>, window_params = [{transform_indices = @transform_0, window_bounds = array<i64: 128, 128>}, {transform_indices = @transform_1, window_bounds = array<i64: 128, 128>}, {transform_indices = @transform_2, window_bounds = array<i64: 1, 128>}, {transform_indices = @transform_3, window_bounds = array<i64: 128, 128>}]} {
    %c0_i32 = arith.constant 0 : i32
    %0 = arith.cmpi eq, %arg2, %c0_i32 : i32
    %1 = arith.extui %0 : i1 to i32
    %c0_i32_0 = arith.constant 0 : i32
    %2 = arith.cmpi ne, %1, %c0_i32_0 : i32
    scf.if %2 {
      %cst_10 = arith.constant 0.000000e+00 : f32
      %12 = vector.broadcast %cst_10 : f32 to vector<128x128xf32>
      %c0_11 = arith.constant 0 : index
      %c0_12 = arith.constant 0 : index
      %13 = vector.load %arg7[%c0_11, %c0_12] : memref<128x128xf32, #tpu.memory_space<vmem>>, vector<128x128xf32>
      tpu.vector_store %arg7[%c0_11, %c0_12], %12 {strides = array<i32>} : memref<128x128xf32, #tpu.memory_space<vmem>>, vector<128x128xf32>,
    } else {
    }
    %c0 = arith.constant 0 : index
    %c0_1 = arith.constant 0 : index
    %3 = vector.load %arg7[%c0, %c0_1] : memref<128x128xf32, #tpu.memory_space<vmem>>, vector<128x128xf32>
    %c0_2 = arith.constant 0 : index
    %c0_3 = arith.constant 0 : index
    %4 = vector.load %arg3[%c0_2, %c0_3] : memref<128x128xbf16, #tpu.memory_space<vmem>>, vector<128x128xbf16>
    %c0_4 = arith.constant 0 : index
    %c0_5 = arith.constant 0 : index
    %5 = vector.load %arg4[%c0_4, %c0_5] : memref<128x128xbf16, #tpu.memory_space<vmem>>, vector<128x128xbf16>
    %cst = arith.constant dense<0.000000e+00> : vector<128x128xf32>
    %6 = tpu.matmul %4, %5, %cst {dimension_numbers = #tpu.dot_dimension_numbers<[1], [0], [0], [1], [0, 0, 1, 1], [], []>} : vector<128x128xbf16>, vector<128x128xbf16>, vector<128x128xf32> -> vector<128x128xf32>
    %7 = arith.addf %3, %6 : vector<128x128xf32>
    %c0_6 = arith.constant 0 : index
    %c0_7 = arith.constant 0 : index
    %8 = vector.load %arg7[%c0_6, %c0_7] : memref<128x128xf32, #tpu.memory_space<vmem>>, vector<128x128xf32>
    tpu.vector_store %arg7[%c0_6, %c0_7], %7 {strides = array<i32>} : memref<128x128xf32, #tpu.memory_space<vmem>>, vector<128x128xf32>,
    %c0_i32_8 = arith.constant 0 : i32
    %9 = arith.cmpi eq, %arg2, %c0_i32_8 : i32
    %10 = arith.extui %9 : i1 to i32
    %c0_i32_9 = arith.constant 0 : i32
    %11 = arith.cmpi ne, %10, %c0_i32_9 : i32
    scf.if %11 {
      %c0_10 = arith.constant 0 : index
      %c0_11 = arith.constant 0 : index
      %12 = vector.load %arg7[%c0_10, %c0_11] : memref<128x128xf32, #tpu.memory_space<vmem>>, vector<128x128xf32>
      %c0_12 = arith.constant 0 : index
      %c0_13 = arith.constant 0 : index
      %13 = vector.load %arg5[%c0_12, %c0_13] : memref<1x128xf32, #tpu.memory_space<vmem>>, vector<1x128xf32>
      %14 = vector.broadcast %13 : vector<1x128xf32> to vector<128x128xf32>
      %15 = arith.addf %12, %14 : vector<128x128xf32>
      %cst_14 = arith.constant 0.000000e+00 : f32
      %16 = vector.broadcast %cst_14 : f32 to vector<128x128xf32>
      %17 = arith.maximumf %15, %16 : vector<128x128xf32>
      %18 = arith.truncf %17 : vector<128x128xf32> to vector<128x128xbf16>
      %c0_15 = arith.constant 0 : index
      %c0_16 = arith.constant 0 : index
      %19 = vector.load %arg6[%c0_15, %c0_16] : memref<128x128xbf16, #tpu.memory_space<vmem>>, vector<128x128xbf16>
      tpu.vector_store %arg6[%c0_15, %c0_16], %18 {strides = array<i32>} : memref<128x128xbf16, #tpu.memory_space<vmem>>, vector<128x128xbf16>,
    } else {
    }
    return
  }
  func.func @transform_0(%arg0: i32, %arg1: i32, %arg2: i32) -> (i32, i32) {
    %c0_i32 = arith.constant 0 : i32
    return %arg0, %arg2 : i32, i32
  }
  func.func @transform_1(%arg0: i32, %arg1: i32, %arg2: i32) -> (i32, i32) {
    %c0_i32 = arith.constant 0 : i32
    return %arg2, %arg1 : i32, i32
  }
  func.func @transform_2(%arg0: i32, %arg1: i32, %arg2: i32) -> (i32, i32) {
    %c0_i32 = arith.constant 0 : i32
    %c0_i32_0 = arith.constant 0 : i32
    return %c0_i32, %arg1 : i32, i32
  }
  func.func @transform_3(%arg0: i32, %arg1: i32, %arg2: i32) -> (i32, i32) {
    %c0_i32 = arith.constant 0 : i32
    return %arg0, %arg1 : i32, i32
  }
}

</mosaic_0001>

<bundles_post_ra>
// kernel: tpu_custom_call.1
= control target key start
LH: loop header
LB: loop body
LE: loop exit
PB: predicated region body
PF: predicated region fallthrough
CT: control target
= control target key end

     0   :  { %8 = vsyncpa [#allocation4], 0  ;;  %s1472_s0 = inlined_call_operand.hbm [shape: bf16[256,128], index: 0, kind: input, shape index: {}]   ;;  %s1473_s1 = inlined_call_operand.hbm [shape: bf16[128,128], index: 1, kind: input, shape index: {}]   ;;  %s1474_s2 = inlined_call_operand.vmem [shape: f32[1,128], index: 2, kind: input, shape index: {}]   ;;  %s1475_s3 = inlined_call_operand.hbm [shape: bf16[256,128], index: 3, kind: output, shape index: {}]  }
   0x1   :  { %10 = vsyncpa [#allocation4 + $0x1], 0 }
   0x2   :  { %11 = vsyncpa [#allocation7], 0 }
   0x3   :  { %12 = vsyncpa [#allocation5], 0 }
   0x4   :  { %14 = vsyncpa [#allocation5 + $0x1], 0  ;;  %s1257_s12 = smov 0   ;;  %s1259_s13 = smov 0  }
   0x5   :  { %s1261_s14 = smov 0   ;;  %s1263_s15 = smov 0  }
   0x6   :  { %s1265_s16 = smov 0   ;;  %s1267_s17 = smov 0  }
   0x7 LB: > { %s817_s18 = sadd.s32 4294967295, %s1228_s17   ;;  %s818_s19 = sadd.s32 4294967294, %s1228_s17   ;;  %s1228_s17 = sphi %s1267_s17, %s20_s17   ;;  %s1224_s16 = sphi %s1265_s16, %s1497_s16   ;;  %s1220_s15 = sphi %s1263_s15, %s1496_s15   ;;  %s1216_s14 = sphi %s1261_s14, %s1495_s14   ;;  %s1212_s13 = sphi %s1259_s13, %s1494_s13   ;;  %s1208_s12 = sphi %s1257_s12, %s1493_s12  }
   0x8   : > { %p61_p0 = scmp.ne.s32.totalorder %s1212_s13, %s1208_s12  ;;  %p1291_p1 = scmp.eq.s32.totalorder %s817_s18, 0 }
   0x9   : > { %p1295_p2 = scmp.eq.s32.totalorder %s817_s18, 1  ;;  %p147_p3 = scmp.eq.s32.totalorder %s818_s19, 1 }
   0xa   : > { %p1301_p4 = por %p1291_p1, %p61_p0  ;;  %p819_p5 = scmp.ge.s32.totalorder %s1228_s17, 1 }
   0xb   : > { %p1306_p6 = por %p147_p3, %p61_p0  ;;  %p154_p7 = scmp.lt.s32.totalorder %s1228_s17, 3 }
   0xc   : > { %s1481_s22 = scalar_select %p1301_p4, 1, 0 }
   0xd   : > { %s1482_s23 = scalar_select %p1306_p6, 1, 0 }
   0xe   : > { %p1311_p8 = pnand %p819_p5, %p154_p7  ;;  %s1230_s25 = smov [#allocation6]  }
   0xf   : > { %s170_s26 = sshll.u32 %s1230_s25, 4  ;;  %s39_s28 = sadd.s32 1, %s1224_s16  ;;  %s171_s26 = int_to_ptr.vmem [resolvable:$true] %s170_s26 }
  0x10   : > { %p1005_p9 = pneg %p1311_p8  ;;  %s1101_s29 = scalar_lea.vmem %s171_s26, 1024 }
  0x11   : > { %p1102_p13 = scmp.ne.s32.totalorder %s171_s26, %s1101_s29  ;;  %p1109_p5 = scmp.lt.s32.totalorder %s171_s26, %s171_s26 }
  0x12   : > { %p1320_p11 = pnand %p1005_p9, %p1291_p1  ;;  %p1110_p7 = scmp.lt.s32.totalorder %s1101_s29, %s1101_s29 }
  0x14   : > { %p1092_p12 = pneg %p1320_p11  ;;  %p1111_p6 = por %p1110_p7, %p1109_p5 }
  0x16   : > { %p1104_p0 = pnand %p1102_p13, %p1092_p12 }
  0x18   : > { %p1105_p3 = pneg %p1104_p0 }
  0x1a   : > { %p1112_p4 = pnand %p1111_p6, %p1105_p3 }
  0x1c   : > { %1115 = shalt.err (!%p1112_p4)
}
  0x1d   : > { %s1477_s30 = smov 64   ;;  %s1478_s4 = smov 4  }
  0x1e   : > { %1008 = dma.hbm_to_vmem [thread:$0]  (!%p1320_p11), %s1473_s1, 1024, %s171_s26, [#allocation7], %s1477_s30, %s1477_s30, %s1478_s4  }
  0x1f   : > { %p41_p4 = scmp.ge.s32.totalorder %s39_s28, 2  ;;  %s48_s7 = sadd.s32 1, %s1216_s14 }
  0x20   : > { %p55_p6 = scmp.ne.s32.totalorder %s1216_s14, %s1212_s13  ;;  %p56_p9 = scmp.eq.s32.totalorder %s1228_s17, 0 }
  0x21   : > { %s1499_s28 = smov (%p41_p4, %s39_s28), 0  ;;  %p1018_p0 = scmp.lt.s32.totalorder %s1228_s17, 2 }
  0x22   : > { %p1341_p12 = por %p56_p9, %p55_p6  ;;  %p1347_p13 = por %p1295_p2, %p55_p6 }
  0x23   : > { %s43_s10 = ssub.s32 %s1224_s16, %s1499_s28  ;;  %s190_s11 = sand.u32 1, %s1216_s14  }
  0x24   : > { %p46_p11 = scmp.eq.s32.totalorder %s43_s10, 0  ;;  %s823_s18 = sshll.u32 %s190_s11, 6 }
  0x25   : > { %s868_s25 = sshll.u32 %s1224_s16, 10  ;;  %s194_s5 = scalar_lea.vmem [#allocation3], %s823_s18 }
  0x26   : > { %s1356_s19 = scalar_select %p46_p11, %s1216_s14, %s48_s7  }
  0x27   : > { %s201_s29 = scalar_lea.hbm %s1472_s0, %s868_s25  ;;  %s202_s6 = sshll.u32 %s194_s5, 4  ;;  %s203_s6 = int_to_ptr.vmem [resolvable:$true] %s202_s6 }
  0x28   : > { %p1364_p2 = pnand %p1018_p0, %p1341_p12  ;;  %s191_s30 = scalar_lea.sflag [#allocation4], %s190_s11 }
  0x29   : > { %s1129_s10 = scalar_lea.vmem %s203_s6, 1024  ;;  %s1233_s7 = smov [#allocation3]  }
  0x2a   : > { %p1118_p3 = pneg %p1364_p2  ;;  %p1130_p5 = scmp.ne.s32.totalorder %s203_s6, %s1129_s10 }
  0x2b   : > { %s1134_s4 = sshll.u32 %s1233_s7, 4  ;;  %s1135_s4 = int_to_ptr.vmem [resolvable:$false] %s1134_s4 }
  0x2c   : > { %p1132_p7 = pnand %p1130_p5, %p1118_p3  ;;  %s1136_s25 = scalar_lea.vmem %s1135_s4, 2048 }
  0x2d   : > { %p1137_p6 = scmp.lt.s32.totalorder %s203_s6, %s1135_s4  ;;  %p1138_p9 = scmp.lt.s32.totalorder %s1136_s25, %s1129_s10 }
  0x2e   : > { %p1133_p4 = pneg %p1132_p7 }
  0x2f   : > { %p1139_p11 = por %p1138_p9, %p1137_p6 }
  0x31   : > { %p1140_p10 = pnand %p1139_p11, %p1133_p4 }
  0x33   : > { %1143 = shalt.err (!%p1140_p10)
}
  0x34   : > { %s1488_s8 = smov 4   ;;  %s1489_s18 = smov 64  }
  0x35   : > { %1012 = dma.hbm_to_vmem [thread:$0]  (!%p1364_p2), %s201_s29, 1024, %s203_s6, %s191_s30, %s1489_s18, %s1489_s18, %s1488_s8  }
  0x36   : > { %214 = sbr.rel (%p1311_p8) target bundleno = 322 (0x142), region = 32  ;;  %s1378_s11 = sand.u32 (!%p1311_p8), 1, %s1212_s13  }
  0x37   : > { %s827_s4 = sshll.u32 (!%p1311_p8), %s1378_s11, 6  ;;  %s217_s26 = scalar_lea.sflag (!%p1311_p8), [#allocation4], %s1378_s11 }
  0x38   : > { %s1384_s27 = scalar_lea.vmem (!%p1311_p8), [#allocation3], %s827_s4  ;;  %p1490_p10 = scmp.ne.s32.totalorder (!%p1311_p8), %s1481_s22, 0 }
  0x3b   : > { %1195 = dma.done.wait (%p1490_p10), %s217_s26, 1024  }
  0x3c   : > { %1197 = vsyncadd (%p1490_p10), %s217_s26, 4294966272 }
  0x3d   : > { %1199 = dma.done.wait (%p1291_p1), [#allocation7], 1024  }
  0x3e   : > { %1201 = vsyncadd (%p1291_p1), [#allocation7], 4294966272  ;;  %v1074_v0 = vld [vmem:[#allocation6 + $0x38] sm:$0xff]   ;;  %v1075_v1 = vld [vmem:[#allocation6 + $0x30] sm:$0xff]   ;;  %s1407_s24 = scalar_lea.vmem [#allocation8], %s827_s4  ;;  %s885_s29 = sshll.u32 %s1220_s15, 10 }
  0x3f   : > { %949 = vmatprep.subr.bf16.mxu0 %v1074_v0  ;;  %981 = vmatprep.subr.bf16.mxu1 %v1074_v0  ;;  %v1076_v2 = vld [vmem:[#allocation6 + $0x28] sm:$0xff]   ;;  %v1077_v3 = vld [vmem:[#allocation6 + $0x20] sm:$0xff]   ;;  %v1078_v6 = vld [vmem:[#allocation6 + $0x18] sm:$0xff]   ;;  %s703_s30 = sshll.u32 %s1407_s24, 4  ;;  %s1420_s21 = scalar_lea.hbm %s1475_s3, %s885_s29  ;;  %s1415_s30 = int_to_ptr.vmem [resolvable:$true] %s703_s30 }
  0x40   : > { %950 = vmatpush3.bf16.msra.mxu0 %v1074_v0  ;;  %989 = vmatpush3.bf16.msra.mxu1 %v1074_v0  ;;  %v1082_v4 = vld [vmem:[%s1384_s27] sm:$0xff]   ;;  %v1079_v7 = vld [vmem:[#allocation6 + $0x10] sm:$0xff]   ;;  %v1080_v8 = vld [vmem:[#allocation6 + $0x8] sm:$0xff]   ;;  %s689_s15 = scalar_lea.sflag [#allocation5], %s1378_s11  ;;  %s1144_s10 = scalar_lea.vmem %s1415_s30, 1024 }
  0x41   : > { %951 = vmatprep.subr.bf16.mxu0 %v1075_v1  ;;  %982 = vmatprep.subr.bf16.mxu1 %v1075_v1  ;;  %v1083_v5 = vld [vmem:[%s1384_s27 + $0x20] sm:$0xff]   ;;  %v1084_v10 = vld [vmem:[%s1384_s27 + $0x8] sm:$0xff]   ;;  %v1086_v12 = vld [vmem:[%s1384_s27 + $0x10] sm:$0xff]   ;;  %p1145_p1 = scmp.ne.s32.totalorder %s1415_s30, %s1144_s10  ;;  %s1234_s7 = smov [#allocation8]  }
  0x42   : > { %965 = vmatprep.mubr.bf16.mxu0 %v1082_v4  ;;  %973 = vmatprep.mubr.bf16.mxu1 %v1083_v5  ;;  %v1081_v9 = vld [vmem:[#allocation6] sm:$0xff]   ;;  %v1085_v11 = vld [vmem:[%s1384_s27 + $0x28] sm:$0xff]   ;;  %v1087_v13 = vld [vmem:[%s1384_s27 + $0x30] sm:$0xff]   ;;  %s1148_s25 = sshll.u32 %s1234_s7, 4  ;;  %s1149_s25 = int_to_ptr.vmem [resolvable:$false] %s1148_s25 }
  0x43   : > { %v1088_v14 = vld [vmem:[%s1384_s27 + $0x18] sm:$0xff]   ;;  %v846_v16 = vld [vmem:[%s1474_s2] ss:$0 sm:$0xff]  ;;  %p1146_p8 = pnand %p1145_p1, %p1347_p13  ;;  %s1150_s8 = scalar_lea.vmem %s1149_s25, 2048 }
  0x44   : > { %952 = vmatpush3.bf16.msra.mxu0 %v1075_v1  ;;  %990 = vmatpush3.bf16.msra.mxu1 %v1075_v1  ;;  %v1089_v15 = vld [vmem:[%s1384_s27 + $0x38] sm:$0xff]   ;;  %p1151_p0 = scmp.lt.s32.totalorder %s1415_s30, %s1149_s25  ;;  %p1152_p2 = scmp.lt.s32.totalorder %s1150_s8, %s1144_s10 }
  0x45   : > { %953 = vmatprep.subr.bf16.mxu0 %v1076_v2  ;;  %983 = vmatprep.subr.bf16.mxu1 %v1076_v2  ;;  %p1147_p12 = pneg %p1146_p8 }
  0x46   : > { %p1153_p3 = por %p1152_p2, %p1151_p0 }
  0x48   : > { %954 = vmatpush3.bf16.msra.mxu0 %v1076_v2  ;;  %991 = vmatpush3.bf16.msra.mxu1 %v1076_v2  ;;  %p1154_p5 = pnand %p1153_p3, %p1147_p12 }
  0x49   : > { %955 = vmatprep.subr.bf16.mxu0 %v1077_v3  ;;  %984 = vmatprep.subr.bf16.mxu1 %v1077_v3 }
  0x4c   : > { %956 = vmatpush3.bf16.msra.mxu0 %v1077_v3  ;;  %992 = vmatpush3.bf16.msra.mxu1 %v1077_v3 }
  0x4d   : > { %957 = vmatprep.subr.bf16.mxu0 %v1078_v6  ;;  %985 = vmatprep.subr.bf16.mxu1 %v1078_v6 }
  0x50   : > { %958 = vmatpush3.bf16.msra.mxu0 %v1078_v6  ;;  %993 = vmatpush3.bf16.msra.mxu1 %v1078_v6 }
  0x51   : > { %959 = vmatprep.subr.bf16.mxu0 %v1079_v7  ;;  %986 = vmatprep.subr.bf16.mxu1 %v1079_v7 }
  0x54   : > { %960 = vmatpush3.bf16.msra.mxu0 %v1079_v7  ;;  %994 = vmatpush3.bf16.msra.mxu1 %v1079_v7 }
  0x55   : > { %961 = vmatprep.subr.bf16.mxu0 %v1080_v8  ;;  %987 = vmatprep.subr.bf16.mxu1 %v1080_v8 }
  0x58   : > { %962 = vmatpush3.bf16.msra.mxu0 %v1080_v8  ;;  %995 = vmatpush3.bf16.msra.mxu1 %v1080_v8 }
  0x59   : > { %963 = vmatprep.subr.bf16.mxu0 %v1081_v9  ;;  %988 = vmatprep.subr.bf16.mxu1 %v1081_v9 }
  0x5c   : > { %964 = vmatpush3.bf16.msra.mxu0 %v1081_v9  ;;  %996 = vmatpush3.bf16.msra.mxu1 %v1081_v9 }
  0x5f   : > { %966 = vmatmul.mubr.bf16.vlgmr.msra.gmra.mxu0 %v1084_v10  ;;  %974 = vmatmul.mubr.bf16.vlgmr.msra.gmra.mxu1 %v1085_v11 }
  0x60   : > { %969 = vmatprep.mubr.bf16.mxu0 %v1086_v12  ;;  %977 = vmatprep.mubr.bf16.mxu1 %v1087_v13 }
  0x67   : > { %970 = vmatmul.mubr.bf16.gmra.mxu0 %v1088_v14  ;;  %978 = vmatmul.mubr.bf16.gmra.mxu1 %v1089_v15 }
 0x11f   : > { %v967_v17 = vpop.f32.mrf.mxu0  ;;  %v975_v18 = vpop.f32.mrf.mxu1 }
 0x120   : > { %v578_v19 = vadd.f32 %v967_v17, %v846_v16  ;;  %v586_v20 = vadd.f32 %v975_v18, %v846_v16 }
 0x121   : > { %v455_v21 = vpop.f32.mrf.mxu0  ;;  %v487_v22 = vpop.f32.mrf.mxu1 }
 0x122   : > { %v576_v23 = vadd.f32 %v846_v16, %v455_v21  ;;  %v584_v24 = vadd.f32 %v846_v16, %v487_v22  ;;  %v594_v29 = vmax.f32 %v578_v19, 0.0  ;;  %v602_v30 = vmax.f32 %v586_v20, 0.0 }
 0x123   : > { %v968_v25 = vpop.f32.mrf.mxu0  ;;  %v976_v26 = vpop.f32.mrf.mxu1 }
 0x124   : > { %v579_v27 = vadd.f32 %v968_v25, %v846_v16  ;;  %v587_v28 = vadd.f32 %v976_v26, %v846_v16  ;;  %v592_v37 = vmax.f32 %v576_v23, 0.0  ;;  %v600_v38 = vmax.f32 %v584_v24, 0.0 }
 0x125   : > { %v458_v31 = vpop.f32.mrf.mxu0  ;;  %v490_v32 = vpop.f32.mrf.mxu1 }
 0x126   : > { %v595_v33 = vmax.f32 %v579_v27, 0.0  ;;  %v603_v34 = vmax.f32 %v587_v28, 0.0  ;;  %v577_v35 = vadd.f32 %v846_v16, %v458_v31  ;;  %v585_v36 = vadd.f32 %v846_v16, %v490_v32 }
 0x127   : > { %v971_v39 = vpop.f32.mrf.mxu0  ;;  %v979_v40 = vpop.f32.mrf.mxu1 }
 0x128   : > { %v894_v41 = vpack.c.bf16 %v595_v33, %v594_v29  ;;  %v914_v42 = vpack.c.bf16 %v603_v34, %v602_v30  ;;  %v593_v43 = vmax.f32 %v577_v35, 0.0  ;;  %v601_v44 = vmax.f32 %v585_v36, 0.0 }
 0x129   : > { %v582_v45 = vadd.f32 %v971_v39, %v846_v16  ;;  %v590_v46 = vadd.f32 %v979_v40, %v846_v16  ;;  %v471_v47 = vpop.f32.mrf.mxu0  ;;  %v503_v48 = vpop.f32.mrf.mxu1 }
 0x12a   : > { %926 = vst [vmem:[%s1407_s24 + $0x8] sm:$0xff] %v894_v41   ;;  %930 = vst [vmem:[%s1407_s24 + $0x28] sm:$0xff] %v914_v42   ;;  %v889_v49 = vpack.c.bf16 %v593_v43, %v592_v37  ;;  %v909_v50 = vpack.c.bf16 %v601_v44, %v600_v38  ;;  %v580_v51 = vadd.f32 %v846_v16, %v471_v47 }
 0x12b   : > { %v588_v52 = vadd.f32 %v846_v16, %v503_v48  ;;  %v972_v53 = vpop.f32.mrf.mxu0  ;;  %v980_v54 = vpop.f32.mrf.mxu1  ;;  %v598_v57 = vmax.f32 %v582_v45, 0.0  ;;  %v606_v58 = vmax.f32 %v590_v46, 0.0 }
 0x12c   : > { %890 = vst [vmem:[%s1407_s24] sm:$0xff] %v889_v49   ;;  %929 = vst [vmem:[%s1407_s24 + $0x20] sm:$0xff] %v909_v50   ;;  %v583_v55 = vadd.f32 %v972_v53, %v846_v16  ;;  %v591_v56 = vadd.f32 %v980_v54, %v846_v16  ;;  %v596_v1 = vmax.f32 %v580_v51, 0.0 }
 0x12d   : > { %v474_v59 = vpop.f32.mrf.mxu0  ;;  %v506_v60 = vpop.f32.mrf.mxu1  ;;  %v604_v2 = vmax.f32 %v588_v52, 0.0 }
 0x12e   : > { %v599_v61 = vmax.f32 %v583_v55, 0.0  ;;  %v607_v62 = vmax.f32 %v591_v56, 0.0  ;;  %v581_v63 = vadd.f32 %v846_v16, %v474_v59  ;;  %v589_v0 = vadd.f32 %v846_v16, %v506_v60 }
 0x130   : > { %v904_v3 = vpack.c.bf16 %v599_v61, %v598_v57  ;;  %v924_v4 = vpack.c.bf16 %v607_v62, %v606_v58  ;;  %v597_v5 = vmax.f32 %v581_v63, 0.0  ;;  %v605_v6 = vmax.f32 %v589_v0, 0.0 }
 0x132   : > { %928 = vst [vmem:[%s1407_s24 + $0x18] sm:$0xff] %v904_v3   ;;  %932 = vst [vmem:[%s1407_s24 + $0x38] sm:$0xff] %v924_v4   ;;  %v899_v7 = vpack.c.bf16 %v597_v5, %v596_v1  ;;  %v919_v8 = vpack.c.bf16 %v605_v6, %v604_v2 }
 0x134   : > { %927 = vst [vmem:[%s1407_s24 + $0x10] sm:$0xff] %v899_v7   ;;  %931 = vst [vmem:[%s1407_s24 + $0x30] sm:$0xff] %v919_v8  }
 0x135   : > { %1157 = shalt.err (!%p1154_p5)
}
 0x136   : > { %s1158_s18 = scalar_lea.hbm %s1420_s21, 1024  ;;  %s1162_s27 = scalar_lea.hbm %s1475_s3, 2048 }
 0x137   : > { %p1159_p7 = scmp.ne.s32.totalorder %s1420_s21, %s1158_s18  ;;  %p1163_p9 = scmp.lt.s32.totalorder %s1420_s21, %s1475_s3 }
 0x138   : > { %p1164_p11 = scmp.lt.s32.totalorder %s1162_s27, %s1158_s18 }
 0x139   : > { %p1160_p4 = pnand %p1159_p7, %p1347_p13 }
 0x13a   : > { %p1165_p10 = por %p1164_p11, %p1163_p9 }
 0x13b   : > { %p1161_p6 = pneg %p1160_p4 }
 0x13d   : > { %p1166_p1 = pnand %p1165_p10, %p1161_p6 }
 0x13f   : > { %1169 = shalt.err (!%p1166_p1)
}
 0x140   : > { %s1235_s24 = smov 64   ;;  %s1236_s29 = smov 4  }
 0x141   : > { %1003 = dma.vmem_to_hbm [thread:$0]  (%p1347_p13), %s1415_s30, 1024, %s1420_s21, %s689_s15, %s1235_s24, %s1235_s24, %s1236_s29  }
 0x142 PF: > { %s718_s5 = sand.u32 1, %s1208_s12   ;;  %p1491_p8 = scmp.ne.s32.totalorder %s1482_s23, 0 }
 0x143   : > { %p1492_p12 = scmp.ge.s32.totalorder %s1228_s17, 2  ;;  %s719_s6 = scalar_lea.sflag [#allocation5], %s718_s5 }
 0x145   : > { %p1014_p0 = pnand %p1492_p12, %p1491_p8 }
 0x147   : > { %p1015_p2 = pneg %p1014_p0 }
 0x149   : > { %1203 = dma.done.wait (%p1015_p2), %s719_s6, 1024  }
 0x14a   : > { %1205 = vsyncadd (%p1015_p2), %s719_s6, 4294966272  ;;  %s20_s17 = sadd.s32 1, %s1228_s17   ;;  %s1493_s12 = smov %s1212_s13 }
 0x14b   : > { %p17_p3 = scmp.ge.s32.totalorder %s20_s17, 4   ;;  %s1494_s13 = smov %s1216_s14 }
 0x14c   : > { %s1495_s14 = smov %s1356_s19  ;;  %s1496_s15 = smov %s1224_s16 }
 0x14d   : > { %s1497_s16 = smov %s1499_s28  ;;  %19 = sbr.rel (!%p17_p3) target bundleno = 7 (0x7), region = 93 }
 0x152   :  { %724 = vsyncpa [#allocation4], 1 }
 0x153   :  { %726 = vsyncpa [#allocation4 + $0x1], 1 }
 0x154   :  { %727 = vsyncpa [#allocation7], 1 }
 0x155   :  { %728 = vsyncpa [#allocation5], 1 }
 0x156   :  { %730 = vsyncpa [#allocation5 + $0x1], 1 }

</bundles_post_ra>
